<compile_context>
chip_gen: v5e
topology: v5e:2x2
jax: 0.10.0
libtpu: 0.0.40
codegen_flags: <defaults>
</compile_context>

<pallas_src>
import functools

import jax
import jax.numpy as jnp
from jax.experimental import pallas as pl
from jax.experimental.pallas import tpu as pltpu


# ----------------------------- Pallas kernel --------------------------------
def _agca_kernel(scal_ref, x_ref, wpk_ref, o_ref, g_ref, *, C, hC, Bt, seg):
    x = x_ref[...]                                        # (Bt*C, HW)

    # Adaptive average pool: one lane reduce over the spatial axis.
    p = jnp.mean(x, axis=-1, keepdims=True)               # (Bt*C, 1)

    # Packed small weights (each segment padded to `seg` sublanes).
    w1t = wpk_ref[0 * seg:0 * seg + C, :]                 # (C, hC)  = conv1.weight^T
    a2 = wpk_ref[1 * seg:1 * seg + hC, :]                 # (hC, hC)
    w4 = wpk_ref[2 * seg:2 * seg + C, :]                  # (C, hC)  = conv4.weight
    eye = wpk_ref[3 * seg:3 * seg + hC, :]                # (hC, hC) identity (row<->col flip)

    w2 = scal_ref[0]                                      # conv2 scalar (SMEM)
    w3 = scal_ref[1]                                      # conv3 scalar (SMEM)

    # Tiny per-item channel-attention math: static unroll over the Bt items in
    # this block; every op below is a single-vreg VPU broadcast / reduce.
    for b in range(Bt):
        p_b = p[b * C:(b + 1) * C, :]                     # (C, 1) pooled channels
        # conv1: y[h] = sum_c W1[h, c] * p[c]   (sublane reduce -> row form)
        y_row = jnp.sum(w1t * p_b, axis=0, keepdims=True)          # (1, hC)
        # row -> column flip via the identity (lane reduce); feeds the A2 term
        y_col = jnp.sum(eye * y_row, axis=1, keepdims=True)        # (hC, 1)
        # conv2 (scalar, no bias) + softmax over the hidden channels
        z = y_row * w2
        z = z - jnp.max(z, axis=1, keepdims=True)
        e = jnp.exp(z)
        s_row = e / jnp.sum(e, axis=1, keepdims=True)              # (1, hC)
        # y @ (diag(s) + A2): diag term stays in row form, A2 term via a
        # sublane reduce -- A itself is never materialized.
        a_row = jnp.sum(a2 * y_col, axis=0, keepdims=True)         # (1, hC)
        y2 = y_row * s_row + a_row                                 # (1, hC)
        # conv3 (scalar, no bias) + ReLU
        y3 = jnp.maximum(y2 * w3, 0.0)                             # (1, hC)
        # conv4 (hC -> C) + sigmoid: lane reduce -> per-item gate column
        t_col = jnp.sum(w4 * y3, axis=1, keepdims=True)            # (C, 1)
        g_ref[b * C:(b + 1) * C, :] = jax.nn.sigmoid(t_col)

    # Channel gating: one dense, lane-aligned store of the whole block.
    o_ref[...] = x * g_ref[...]


# ----------------------------- block sizing ----------------------------------
def _pick_block_items(N, C, HW, itemsize=4, max_block_bytes=4 << 20, max_unroll=16):
    """Batch items per grid step: sublane-dense (Bt*C % 8 == 0), divides N,
    fits a modest VMEM budget, and (when possible) leaves >= 2 grid steps so
    v7x's two TensorCores both get work."""
    cands = [bt for bt in range(1, min(N, max_unroll) + 1)
             if N % bt == 0
             and bt * C * HW * itemsize <= max_block_bytes
             and ((bt * C) % 8 == 0 or bt == N)]
    if not cands:
        return N
    multi = [bt for bt in cands if N // bt >= 2]
    return max(multi) if multi else max(cands)


# ----------------------------- wrapper ---------------------------------------
def agca_pallas(x_nchw, W1, w2, A2, w3, W4):
    N, C, H, W = x_nchw.shape
    HW = H * W
    hC = W1.shape[0]
    f32 = jnp.float32

    # NCHW -> (N*C, HW): pure reshape, no transpose; sublane axis = N*C.
    x2d = x_nchw.reshape(N * C, HW).astype(f32)

    Bt = _pick_block_items(N, C, HW)
    n_steps = N // Bt
    BC = Bt * C

    # conv2 / conv3 scalars -> one SMEM vector (no padded VMEM tiles, no DMA
    # descriptors for (1,1) blocks).
    scal = jnp.stack([jnp.asarray(w2, f32).reshape(()),
                      jnp.asarray(w3, f32).reshape(())])

    # Pack the tiny weights into one sublane-aligned array -> one weight DMA.
    seg = ((max(C, hC) + 7) // 8) * 8

    def _pad_rows(a):
        a = jnp.asarray(a, f32)
        return jnp.pad(a, ((0, seg - a.shape[0]), (0, 0)))

    wpack = jnp.concatenate(
        [_pad_rows(W1.T),                       # (C, hC)
         _pad_rows(A2),                         # (hC, hC)
         _pad_rows(W4),                         # (C, hC)
         _pad_rows(jnp.eye(hC, dtype=f32))],    # (hC, hC)
        axis=0)                                 # (4*seg, hC)

    kernel = functools.partial(_agca_kernel, C=C, hC=hC, Bt=Bt, seg=seg)

    # NOTE: for very large H*W where a (Bt*C, HW) block no longer fits VMEM,
    # add an HW grid axis ("arbitrary") with a pooled-sum accumulator and a
    # second pass over the same HW tiles for the gating; not needed here.
    out = pl.pallas_call(
        kernel,
        out_shape=jax.ShapeDtypeStruct((N * C, HW), f32),
        grid=(n_steps,),
        in_specs=[
            pl.BlockSpec(memory_space=pltpu.MemorySpace.SMEM),   # conv2/conv3 scalars
            pl.BlockSpec((BC, HW), lambda n: (n, 0)),            # activations
            pl.BlockSpec((4 * seg, hC), lambda n: (0, 0)),       # packed weights
        ],
        out_specs=pl.BlockSpec((BC, HW), lambda n: (n, 0)),
        scratch_shapes=[pltpu.VMEM((BC, 1), f32)],               # per-block gate column
        compiler_params=pltpu.CompilerParams(
            dimension_semantics=("parallel",)),
    )(scal, x2d, wpack)

    return out.reshape(N, C, H, W)


# --------------------------- pure-JAX reference -------------------------------
def agca_ref(x, W1, w2, A2, w3, W4):
    p = jnp.mean(x, axis=(2, 3))                  # adaptive avg pool -> (B, C)
    y = p @ W1.T                                  # conv1 (1x1, no bias) -> (B, hC)
    a1 = jax.nn.softmax(w2 * y, axis=-1)          # conv2 (scalar) + softmax(dim=2)
    y2 = y * a1 + y @ A2                          # y_row @ (A0*A1 + A2)
    y3 = jnp.maximum(w3 * y2, 0.0)                # conv3 (scalar) + relu
    g = jax.nn.sigmoid(y3 @ W4.T)                 # conv4 (1x1, no bias) + sigmoid
    return x * g[:, :, None, None]                # channel gating


# ------------------------------ main ------------------------------------------
if __name__ == "__main__":
    N, C, H, W = 2, 4, 16, 16          # in_channel=4, ratio=2 -> hide_channel=2
    ratio = 2
    hC = C // ratio

    key = jax.random.PRNGKey(0)
    kx, k1, k2, k3, k4, k5 = jax.random.split(key, 6)
    x = jax.random.normal(kx, (N, C, H, W), jnp.float32)

    W1 = 0.3 * jax.random.normal(k1, (hC, C), jnp.float32)      # conv1 weight
    w2 = 1.0 + 0.5 * jax.random.normal(k2, (), jnp.float32)     # conv2 (Conv1d(1,1,1))
    # Module inits A2 to 1e-6; use random values here so the A2 path is exercised.
    A2 = 0.1 * jax.random.normal(k3, (hC, hC), jnp.float32)
    w3 = 1.0 + 0.5 * jax.random.normal(k4, (), jnp.float32)     # conv3 (Conv1d(1,1,1))
    W4 = 0.3 * jax.random.normal(k5, (C, hC), jnp.float32)      # conv4 weight

    y = agca_pallas(x, W1, w2, A2, w3, W4)
    jax.block_until_ready(y)

    y_ref = agca_ref(x, W1, w2, A2, w3, W4)
    err = float(jnp.max(jnp.abs(y - y_ref)))
    assert jnp.allclose(y, y_ref, rtol=1e-4, atol=1e-4), err
    print("KERNEL_OK")
</pallas_src>

<mosaic_0001>
module attributes {stable_mosaic.version = 11 : i64} {
  func.func @_agca_kernel(%arg0: i32, %arg1: memref<2xf32, #tpu.memory_space<smem>>, %arg2: memref<8x256xf32, #tpu.memory_space<vmem>>, %arg3: memref<32x2xf32, #tpu.memory_space<vmem>>, %arg4: memref<8x256xf32, #tpu.memory_space<vmem>>, %arg5: memref<8x1xf32, #tpu.memory_space<vmem>>) attributes {dimension_semantics = [#tpu.dimension_semantics<parallel>], iteration_bounds = array<i64: 1>, scalar_prefetch = 0 : i64, scratch_operands = 1 : i64, tpu.core_type = #tpu.core_type<tc>, window_params = [{transform_indices = @transform_0, window_bounds = array<i64: 2>}, {transform_indices = @transform_1, window_bounds = array<i64: 8, 256>}, {pipeline_mode = #tpu.pipeline_mode<synchronous>, transform_indices = @transform_2, window_bounds = array<i64: 32, 2>}, {transform_indices = @transform_3, window_bounds = array<i64: 8, 256>}]} {
    %c0 = arith.constant 0 : index
    %c0_0 = arith.constant 0 : index
    %0 = vector.load %arg2[%c0, %c0_0] : memref<8x256xf32, #tpu.memory_space<vmem>>, vector<8x256xf32>
    %cst = arith.constant dense<0.000000e+00> : vector<8xf32>
    %1 = vector.multi_reduction <add>, %0, %cst [1] : vector<8x256xf32> to vector<8xf32>
    %2 = vector.shape_cast %1 : vector<8xf32> to vector<8x1xf32>
    %cst_1 = arith.constant 2.560000e+02 : f32
    %3 = vector.broadcast %cst_1 : f32 to vector<8x1xf32>
    %4 = arith.divf %2, %3 : vector<8x1xf32>
    %c0_2 = arith.constant 0 : index
    %c0_3 = arith.constant 0 : index
    %5 = vector.load %arg3[%c0_2, %c0_3] : memref<32x2xf32, #tpu.memory_space<vmem>>, vector<4x2xf32>
    %c8 = arith.constant 8 : index
    %c0_4 = arith.constant 0 : index
    %6 = vector.load %arg3[%c8, %c0_4] : memref<32x2xf32, #tpu.memory_space<vmem>>, vector<2x2xf32>
    %c16 = arith.constant 16 : index
    %c0_5 = arith.constant 0 : index
    %7 = vector.load %arg3[%c16, %c0_5] : memref<32x2xf32, #tpu.memory_space<vmem>>, vector<4x2xf32>
    %c24 = arith.constant 24 : index
    %c0_6 = arith.constant 0 : index
    %8 = vector.load %arg3[%c24, %c0_6] : memref<32x2xf32, #tpu.memory_space<vmem>>, vector<2x2xf32>
    %c0_7 = arith.constant 0 : index
    %9 = memref.load %arg1[%c0_7] : memref<2xf32, #tpu.memory_space<smem>>
    %c1 = arith.constant 1 : index
    %10 = memref.load %arg1[%c1] : memref<2xf32, #tpu.memory_space<smem>>
    %11 = vector.extract_strided_slice %4 {offsets = [0, 0], sizes = [4, 1], strides = [1, 1]} : vector<8x1xf32> to vector<4x1xf32>
    %12 = vector.broadcast %11 : vector<4x1xf32> to vector<4x2xf32>
    %13 = arith.mulf %5, %12 : vector<4x2xf32>
    %cst_8 = arith.constant dense<0.000000e+00> : vector<2xf32>
    %14 = vector.multi_reduction <add>, %13, %cst_8 [0] : vector<4x2xf32> to vector<2xf32>
    %15 = vector.shape_cast %14 : vector<2xf32> to vector<1x2xf32>
    %16 = vector.broadcast %15 : vector<1x2xf32> to vector<2x2xf32>
    %17 = arith.mulf %8, %16 : vector<2x2xf32>
    %cst_9 = arith.constant dense<0.000000e+00> : vector<2xf32>
    %18 = vector.multi_reduction <add>, %17, %cst_9 [1] : vector<2x2xf32> to vector<2xf32>
    %19 = vector.shape_cast %18 : vector<2xf32> to vector<2x1xf32>
    %20 = vector.broadcast %9 : f32 to vector<1x2xf32>
    %21 = arith.mulf %15, %20 : vector<1x2xf32>
    %cst_10 = arith.constant dense<0xFF800000> : vector<1xf32>
    %22 = vector.multi_reduction <maximumf>, %21, %cst_10 [1] : vector<1x2xf32> to vector<1xf32>
    %23 = vector.shape_cast %22 : vector<1xf32> to vector<1x1xf32>
    %24 = vector.broadcast %23 : vector<1x1xf32> to vector<1x2xf32>
    %25 = arith.subf %21, %24 : vector<1x2xf32>
    %26 = math.exp %25 : vector<1x2xf32>
    %cst_11 = arith.constant dense<0.000000e+00> : vector<1xf32>
    %27 = vector.multi_reduction <add>, %26, %cst_11 [1] : vector<1x2xf32> to vector<1xf32>
    %28 = vector.shape_cast %27 : vector<1xf32> to vector<1x1xf32>
    %29 = vector.broadcast %28 : vector<1x1xf32> to vector<1x2xf32>
    %30 = arith.divf %26, %29 : vector<1x2xf32>
    %31 = vector.broadcast %19 : vector<2x1xf32> to vector<2x2xf32>
    %32 = arith.mulf %6, %31 : vector<2x2xf32>
    %cst_12 = arith.constant dense<0.000000e+00> : vector<2xf32>
    %33 = vector.multi_reduction <add>, %32, %cst_12 [0] : vector<2x2xf32> to vector<2xf32>
    %34 = vector.shape_cast %33 : vector<2xf32> to vector<1x2xf32>
    %35 = arith.mulf %15, %30 : vector<1x2xf32>
    %36 = arith.addf %35, %34 : vector<1x2xf32>
    %37 = vector.broadcast %10 : f32 to vector<1x2xf32>
    %38 = arith.mulf %36, %37 : vector<1x2xf32>
    %cst_13 = arith.constant 0.000000e+00 : f32
    %39 = vector.broadcast %cst_13 : f32 to vector<1x2xf32>
    %40 = arith.maximumf %38, %39 : vector<1x2xf32>
    %41 = vector.broadcast %40 : vector<1x2xf32> to vector<4x2xf32>
    %42 = arith.mulf %7, %41 : vector<4x2xf32>
    %cst_14 = arith.constant dense<0.000000e+00> : vector<4xf32>
    %43 = vector.multi_reduction <add>, %42, %cst_14 [1] : vector<4x2xf32> to vector<4xf32>
    %44 = vector.shape_cast %43 : vector<4xf32> to vector<4x1xf32>
    %45 = arith.negf %44 : vector<4x1xf32>
    %46 = math.exp %45 : vector<4x1xf32>
    %cst_15 = arith.constant 1.000000e+00 : f32
    %47 = vector.broadcast %cst_15 : f32 to vector<4x1xf32>
    %48 = arith.addf %47, %46 : vector<4x1xf32>
    %49 = arith.divf %47, %48 : vector<4x1xf32>
    %c0_16 = arith.constant 0 : index
    %c0_17 = arith.constant 0 : index
    %50 = vector.load %arg5[%c0_16, %c0_17] : memref<8x1xf32, #tpu.memory_space<vmem>>, vector<4x1xf32>
    tpu.vector_store %arg5[%c0_16, %c0_17], %49 {strides = array<i32>} : memref<8x1xf32, #tpu.memory_space<vmem>>, vector<4x1xf32>,
    %51 = vector.extract_strided_slice %4 {offsets = [4, 0], sizes = [4, 1], strides = [1, 1]} : vector<8x1xf32> to vector<4x1xf32>
    %52 = vector.broadcast %51 : vector<4x1xf32> to vector<4x2xf32>
    %53 = arith.mulf %5, %52 : vector<4x2xf32>
    %cst_18 = arith.constant dense<0.000000e+00> : vector<2xf32>
    %54 = vector.multi_reduction <add>, %53, %cst_18 [0] : vector<4x2xf32> to vector<2xf32>
    %55 = vector.shape_cast %54 : vector<2xf32> to vector<1x2xf32>
    %56 = vector.broadcast %55 : vector<1x2xf32> to vector<2x2xf32>
    %57 = arith.mulf %8, %56 : vector<2x2xf32>
    %cst_19 = arith.constant dense<0.000000e+00> : vector<2xf32>
    %58 = vector.multi_reduction <add>, %57, %cst_19 [1] : vector<2x2xf32> to vector<2xf32>
    %59 = vector.shape_cast %58 : vector<2xf32> to vector<2x1xf32>
    %60 = vector.broadcast %9 : f32 to vector<1x2xf32>
    %61 = arith.mulf %55, %60 : vector<1x2xf32>
    %cst_20 = arith.constant dense<0xFF800000> : vector<1xf32>
    %62 = vector.multi_reduction <maximumf>, %61, %cst_20 [1] : vector<1x2xf32> to vector<1xf32>
    %63 = vector.shape_cast %62 : vector<1xf32> to vector<1x1xf32>
    %64 = vector.broadcast %63 : vector<1x1xf32> to vector<1x2xf32>
    %65 = arith.subf %61, %64 : vector<1x2xf32>
    %66 = math.exp %65 : vector<1x2xf32>
    %cst_21 = arith.constant dense<0.000000e+00> : vector<1xf32>
    %67 = vector.multi_reduction <add>, %66, %cst_21 [1] : vector<1x2xf32> to vector<1xf32>
    %68 = vector.shape_cast %67 : vector<1xf32> to vector<1x1xf32>
    %69 = vector.broadcast %68 : vector<1x1xf32> to vector<1x2xf32>
    %70 = arith.divf %66, %69 : vector<1x2xf32>
    %71 = vector.broadcast %59 : vector<2x1xf32> to vector<2x2xf32>
    %72 = arith.mulf %6, %71 : vector<2x2xf32>
    %cst_22 = arith.constant dense<0.000000e+00> : vector<2xf32>
    %73 = vector.multi_reduction <add>, %72, %cst_22 [0] : vector<2x2xf32> to vector<2xf32>
    %74 = vector.shape_cast %73 : vector<2xf32> to vector<1x2xf32>
    %75 = arith.mulf %55, %70 : vector<1x2xf32>
    %76 = arith.addf %75, %74 : vector<1x2xf32>
    %77 = vector.broadcast %10 : f32 to vector<1x2xf32>
    %78 = arith.mulf %76, %77 : vector<1x2xf32>
    %cst_23 = arith.constant 0.000000e+00 : f32
    %79 = vector.broadcast %cst_23 : f32 to vector<1x2xf32>
    %80 = arith.maximumf %78, %79 : vector<1x2xf32>
    %81 = vector.broadcast %80 : vector<1x2xf32> to vector<4x2xf32>
    %82 = arith.mulf %7, %81 : vector<4x2xf32>
    %cst_24 = arith.constant dense<0.000000e+00> : vector<4xf32>
    %83 = vector.multi_reduction <add>, %82, %cst_24 [1] : vector<4x2xf32> to vector<4xf32>
    %84 = vector.shape_cast %83 : vector<4xf32> to vector<4x1xf32>
    %85 = arith.negf %84 : vector<4x1xf32>
    %86 = math.exp %85 : vector<4x1xf32>
    %cst_25 = arith.constant 1.000000e+00 : f32
    %87 = vector.broadcast %cst_25 : f32 to vector<4x1xf32>
    %88 = arith.addf %87, %86 : vector<4x1xf32>
    %89 = arith.divf %87, %88 : vector<4x1xf32>
    %c4 = arith.constant 4 : index
    %c0_26 = arith.constant 0 : index
    %90 = vector.load %arg5[%c4, %c0_26] : memref<8x1xf32, #tpu.memory_space<vmem>>, vector<4x1xf32>
    tpu.vector_store %arg5[%c4, %c0_26], %89 {strides = array<i32>} : memref<8x1xf32, #tpu.memory_space<vmem>>, vector<4x1xf32>,
    %c0_27 = arith.constant 0 : index
    %c0_28 = arith.constant 0 : index
    %91 = vector.load %arg5[%c0_27, %c0_28] : memref<8x1xf32, #tpu.memory_space<vmem>>, vector<8x1xf32>
    %92 = vector.broadcast %91 : vector<8x1xf32> to vector<8x256xf32>
    %93 = arith.mulf %0, %92 : vector<8x256xf32>
    %c0_29 = arith.constant 0 : index
    %c0_30 = arith.constant 0 : index
    %94 = vector.load %arg4[%c0_29, %c0_30] : memref<8x256xf32, #tpu.memory_space<vmem>>, vector<8x256xf32>
    tpu.vector_store %arg4[%c0_29, %c0_30], %93 {strides = array<i32>} : memref<8x256xf32, #tpu.memory_space<vmem>>, vector<8x256xf32>,
    return
  }
  func.func @transform_0(%arg0: i32) -> i32 {
    %c0_i32 = arith.constant 0 : i32
    %c0_i32_0 = arith.constant 0 : i32
    return %c0_i32 : i32
  }
  func.func @transform_1(%arg0: i32) -> (i32, i32) {
    %c0_i32 = arith.constant 0 : i32
    %c0_i32_0 = arith.constant 0 : i32
    return %arg0, %c0_i32 : i32, i32
  }
  func.func @transform_2(%arg0: i32) -> (i32, i32) {
    %c0_i32 = arith.constant 0 : i32
    %c0_i32_0 = arith.constant 0 : i32
    %c0_i32_1 = arith.constant 0 : i32
    return %c0_i32, %c0_i32_0 : i32, i32
  }
  func.func @transform_3(%arg0: i32) -> (i32, i32) {
    %c0_i32 = arith.constant 0 : i32
    %c0_i32_0 = arith.constant 0 : i32
    return %arg0, %c0_i32 : i32, i32
  }
}

</mosaic_0001>

<bundles_post_ra>
// kernel: tpu_custom_call.1
= control target key start
LH: loop header
LB: loop body
LE: loop exit
PB: predicated region body
PF: predicated region fallthrough
CT: control target
= control target key end

     0   :  { %8 = vsyncpa [#allocation5], 0  ;;  %s375_s0 = inlined_call_operand.vmem [shape: f32[2], index: 0, kind: input, shape index: {}]   ;;  %s376_s1 = inlined_call_operand.vmem [shape: f32[8,256], index: 1, kind: input, shape index: {}]   ;;  %s377_s2 = inlined_call_operand.vmem [shape: f32[32,2], index: 2, kind: input, shape index: {}]   ;;  %s378_s3 = inlined_call_operand.hbm [shape: f32[8,256], index: 3, kind: output, shape index: {}]  }
   0x1   :  { %9 = vsyncpa [#allocation4], 0  ;;  %s15_s14 = sshll.u32 %s375_s0, 4  ;;  %s295_s15 = smov [#allocation3]   ;;  %s16_s14 = int_to_ptr.vmem [resolvable:$true] %s15_s14 }
   0x2   :  { %18 = dma.vmem_to_smem %s16_s14, 16, %s295_s15, [#allocation5]  }
   0x3   :  { %291 = dma.done.wait [#allocation5], 16  }
   0x4   :  { %292 = vsyncadd [#allocation5], 4294967280 }
   0x5   :  { %27 = sfence }
   0x6   :  { %v325_v0 = vld [vmem:[%s376_s1] sm:$0xff]  ;;  %v330_v1 = vld [vmem:[%s376_s1 + $0x8] sm:$0xff]  ;;  %v296_v3 = vmov 256.0   ;;  %vm48_vm1 = vcmask 11264   ;;  %s45_s1 = sld [smem:[#allocation3]]  ;;  %vm63_vm2 = vcmask 15360  }
   0x7   :  { %v30_v2 = vadd.f32 %v330_v1, %v325_v0  ;;  %237 = vrcp.f32 %v296_v3  ;;  %v41_v10 = vld [vmem:[%s377_s2] sm:$0xf]  ;;  %v44_v35 = vld [vmem:[%s377_s2 + $0x18] sm:$0x3]  ;;  %vm57_vm3 = vcmask 9216   ;;  %s229_s25 = sld [smem:[#allocation3 + $0x1]] }
   0x8   :  { %v42_v50 = vld [vmem:[%s377_s2 + $0x8] sm:$0x3]  ;;  %vm124_vm13 = vcmask 3072   ;;  %s219_s4 = sshll.u32 %s378_s3, 4  ;;  %s220_s4 = int_to_ptr.hbm [resolvable:$true] %s219_s4 }
   0x9   :  { %31 = vadd.xlane.f32.xlu0 %v30_v2 }
   0xc   :  { %v61_v27 = vstv %s45_s1 }
   0xd   :  { %v238_v4 = vpop.eup %237 }
   0xe   :  { %v34_v5 = vmul.f32 256.0, %v238_v4  ;;  %vm38_vm0 = vweird.f32 %v238_v4 }
  0x10   :  { %v35_v6 = vsub.f32 1.0, %v34_v5 }
  0x12   :  { %v36_v7 = vmul.f32 %v238_v4, %v35_v6 }
  0x14   :  { %v37_v8 = vadd.f32 %v238_v4, %v36_v7 }
  0x16   :  { %v39_v9 = vsel %vm38_vm0, %v238_v4, %v37_v8 }
  0x7c   :  { %v32_v11 = vpop.xlane.xlu0 %31 }
  0x7d   :  { %v40_v12 = vmul.f32 %v39_v9, %v32_v11 }
  0x7f   :  { %v47_v13 = vmul.f32 %v41_v10, %v40_v12  ;;  %v127_v14 = vrot.slane %v40_v12, 4 }
  0x81   :  { %v49_v15 = vsel %vm48_vm1, %v47_v13, 0.0  ;;  %v129_v16 = vmul.f32 %v127_v14, %v41_v10 }
  0x82   :  { %v50_v17 = vrot.slane %v49_v15, 4 }
  0x83   :  { %v130_v18 = vsel %vm48_vm1, %v129_v16, 0.0 }
  0x84   :  { %v51_v19 = vadd.f32 %v50_v17, %v49_v15  ;;  %v131_v20 = vrot.slane %v130_v18, 4 }
  0x86   :  { %v52_v21 = vrot.slane %v51_v19, 2  ;;  %v132_v22 = vadd.f32 %v131_v20, %v130_v18 }
  0x88   :  { %v53_v23 = vadd.f32 %v52_v21, %v51_v19  ;;  %v133_v24 = vrot.slane %v132_v22, 2 }
  0x8a   :  { %v54_v25 = vrot.slane %v53_v23, 1  ;;  %v134_v26 = vadd.f32 %v133_v24, %v132_v22 }
  0x8c   :  { %v339_v28 = vadd.f32 %v54_v25, %v53_v23  ;;  %v135_v29 = vrot.slane %v134_v26, 1 }
  0x8e   :  { %v62_v30 = vmul.f32 %v61_v27, %v339_v28  ;;  %v342_v31 = vadd.f32 %v135_v29, %v134_v26  ;;  %v56_v48 = vmul.f32 %v339_v28, %v44_v35 }
  0x90   :  { %v64_v32 = vsel %vm63_vm2, %v62_v30, -inf  ;;  %v141_v33 = vmul.f32 %v342_v31, %v61_v27  ;;  %v137_v36 = vmul.f32 %v342_v31, %v44_v35  ;;  %v58_v49 = vsel %vm57_vm3, %v56_v48, 0.0 }
  0x91   :  { %65 = vmax.xlane.f32.xlu0 %v64_v32 }
  0x92   :  { %v142_v34 = vsel %vm63_vm2, %v141_v33, -inf  ;;  %v138_v37 = vsel %vm57_vm3, %v137_v36, 0.0 }
  0x93   :  { %143 = vmax.xlane.f32.xlu1 %v142_v34 }
  0x99   :  { %139 = vadd.xlane.f32.xlu0 %v138_v37 }
 0x104   :  { %v66_v38 = vpop.xlane.xlu0 %65 }
 0x105   :  { %v67_v39 = vsub.f32 %v62_v30, %v66_v38 }
 0x106   :  { %v144_v40 = vpop.xlane.xlu1 %143 }
 0x107   :  { %v68_v41 = vmul.f32 1.442695, %v67_v39  ;;  %v145_v42 = vsub.f32 %v141_v33, %v144_v40  ;;  %v98_v33 = vstv %s229_s25  ;;  %v43_v39 = vld [vmem:[%s377_s2 + $0x10] sm:$0xf]  ;;  %s298_s2 = smov [#allocation6]  }
 0x108   :  { %s217_s28 = sshll.u32 %s298_s2, 4  ;;  %s218_s28 = int_to_ptr.vmem [resolvable:$true] %s217_s28 }
 0x109   :  { %239 = vpow2.f32 %v68_v41  ;;  %v146_v43 = vmul.f32 1.442695, %v145_v42 }
 0x10b   :  { %241 = vpow2.f32 %v146_v43 }
 0x10c   :  { %v140_v51 = vpop.xlane.xlu0 %139 }
 0x10d   :  { %v166_v52 = vmul.f32 %v140_v51, %v42_v50 }
 0x10f   :  { %v240_v44 = vpop.eup %239  ;;  %v167_v53 = vsel %vm57_vm3, %v166_v52, 0.0 }
 0x110   :  { %v70_v45 = vsel %vm63_vm2, %v240_v44, 0.0  ;;  %v168_v54 = vrot.slane %v167_v53, 4 }
 0x111   :  { %v242_v46 = vpop.eup %241  ;;  %71 = vadd.xlane.f32.xlu1 %v70_v45 }
 0x112   :  { %v148_v47 = vsel %vm63_vm2, %v242_v46, 0.0  ;;  %v169_v57 = vadd.f32 %v168_v54, %v167_v53 }
 0x113   :  { %149 = vadd.xlane.f32.xlu2 %v148_v47 }
 0x114   :  { %v170_v59 = vrot.slane %v169_v57, 2 }
 0x116   :  { %v171_v6 = vadd.f32 %v170_v59, %v169_v57 }
 0x118   :  { %v172_v21 = vrot.slane %v171_v6, 1 }
 0x11a   :  { %v173_v29 = vadd.f32 %v172_v21, %v171_v6 }
 0x11b   :  { %59 = vadd.xlane.f32.xlu2 %v58_v49 }
 0x184   :  { %v72_v55 = vpop.xlane.xlu1 %71 }
 0x185   :  { %243 = vrcp.f32 %v72_v55  ;;  %v82_v3 = vand.u32 2147483647, %v72_v55  ;;  %v84_v4 = vand.u32 2147483648, %v72_v55  ;;  %vm78_vm5 = vweird.f32 %v72_v55 }
 0x186   :  { %v150_v56 = vpop.xlane.xlu2 %149 }
 0x187   :  { %245 = vrcp.f32 %v150_v56  ;;  %v160_v9 = vand.u32 2147483647, %v150_v56  ;;  %v162_v10 = vand.u32 2147483648, %v150_v56  ;;  %vm83_vm8 = vcmp.eq.f32.partialorder %v82_v3, 8.507059e+37 }
 0x188   :  { %v85_v15 = vor.u32 1.1754944e-38, %v84_v4  ;;  %vm156_vm9 = vweird.f32 %v150_v56 }
 0x189   :  { %v163_v20 = vor.u32 1.1754944e-38, %v162_v10  ;;  %vm161_vm11 = vcmp.eq.f32.partialorder %v160_v9, 8.507059e+37 }
 0x18b   :  { %v244_v58 = vpop.eup %243 }
 0x18c   :  { %v74_v60 = vmul.f32 %v244_v58, %v72_v55  ;;  %vm79_vm4 = vweird.f32 %v244_v58 }
 0x18d   :  { %v246_v61 = vpop.eup %245  ;;  %vm80_vm7 = vmor %vm78_vm5, %vm79_vm4 }
 0x18e   :  { %v75_v62 = vsub.f32 1.0, %v74_v60  ;;  %v152_v63 = vmul.f32 %v246_v61, %v150_v56  ;;  %v60_v2 = vpop.xlane.xlu2 %59  ;;  %vm157_vm6 = vweird.f32 %v246_v61 }
 0x18f   :  { %v88_v5 = vmul.f32 %v60_v2, %v42_v50  ;;  %vm158_vm10 = vmor %vm156_vm9, %vm157_vm6 }
 0x190   :  { %v76_v7 = vmul.f32 %v244_v58, %v75_v62  ;;  %v153_v8 = vsub.f32 1.0, %v152_v63 }
 0x191   :  { %v89_v11 = vsel %vm57_vm3, %v88_v5, 0.0 }
 0x192   :  { %v77_v12 = vadd.f32 %v244_v58, %v76_v7  ;;  %v154_v13 = vmul.f32 %v246_v61, %v153_v8  ;;  %v90_v14 = vrot.slane %v89_v11, 4 }
 0x194   :  { %v81_v16 = vsel %vm80_vm7, %v244_v58, %v77_v12  ;;  %v155_v17 = vadd.f32 %v246_v61, %v154_v13  ;;  %v91_v18 = vadd.f32 %v90_v14, %v89_v11 }
 0x195   :  { %v86_v19 = vsel %vm83_vm8, %v85_v15, %v81_v16 }
 0x196   :  { %v159_v22 = vsel %vm158_vm10, %v246_v61, %v155_v17  ;;  %v92_v23 = vrot.slane %v91_v18, 2  ;;  %v87_v27 = vmul.f32 %v240_v44, %v86_v19 }
 0x197   :  { %v164_v24 = vsel %vm161_vm11, %v163_v20, %v159_v22 }
 0x198   :  { %v93_v25 = vadd.f32 %v92_v23, %v91_v18  ;;  %v165_v26 = vmul.f32 %v242_v46, %v164_v24  ;;  %v96_v36 = vmul.f32 %v87_v27, %v339_v28  ;;  %v297_v28 = vmov 0  }
 0x199   :  { %236 = vset.pattern.permute.xlu0 %v297_v28 }
 0x19a   :  { %v94_v30 = vrot.slane %v93_v25, 1  ;;  %v174_v32 = vmul.f32 %v165_v26, %v342_v31 }
 0x19c   :  { %v95_v34 = vadd.f32 %v94_v30, %v93_v25  ;;  %v175_v35 = vadd.f32 %v174_v32, %v173_v29 }
 0x19e   :  { %v176_v37 = vmul.f32 %v175_v35, %v98_v33  ;;  %v97_v38 = vadd.f32 %v96_v36, %v95_v34 }
 0x1a0   :  { %v177_v40 = vmax.f32 %v176_v37, 0.0  ;;  %v99_v41 = vmul.f32 %v98_v33, %v97_v38 }
 0x1a2   :  { %v178_v42 = vmul.f32 %v177_v40, %v43_v39  ;;  %v100_v43 = vmax.f32 %v99_v41, 0.0 }
 0x1a4   :  { %v179_v44 = vsel %vm48_vm1, %v178_v42, 0.0  ;;  %v101_v45 = vmul.f32 %v100_v43, %v43_v39 }
 0x1a5   :  { %180 = vadd.xlane.f32.xlu2 %v179_v44 }
 0x1a6   :  { %v102_v31 = vsel %vm48_vm1, %v101_v45, 0.0 }
 0x1a7   :  { %103 = vadd.xlane.f32.xlu1 %v102_v31 }
 0x218   :  { %v181_v46 = vpop.xlane.xlu2 %180 }
 0x219   :  { %v231_v47 = vmul.f32 -1.442695, %v181_v46 }
 0x21a   :  { %v104_v48 = vpop.xlane.xlu1 %103 }
 0x21b   :  { %247 = vpow2.f32 %v231_v47  ;;  %v230_v49 = vmul.f32 -1.442695, %v104_v48 }
 0x21d   :  { %249 = vpow2.f32 %v230_v49 }
 0x221   :  { %v248_v50 = vpop.eup %247 }
 0x222   :  { %v185_v51 = vadd.f32 1.0, %v248_v50 }
 0x223   :  { %v250_v52 = vpop.eup %249 }
 0x224   :  { %251 = vrcp.f32 %v185_v51  ;;  %v108_v53 = vadd.f32 1.0, %v250_v52  ;;  %v197_v58 = vand.u32 2147483648, %v185_v51  ;;  %v195_v61 = vand.u32 2147483647, %v185_v51 }
 0x225   :  { %vm191_vm14 = vweird.f32 %v185_v51 }
 0x226   :  { %253 = vrcp.f32 %v108_v53  ;;  %v120_v2 = vand.u32 2147483648, %v108_v53  ;;  %v198_v3 = vor.u32 1.1754944e-38, %v197_v58  ;;  %v118_v5 = vand.u32 2147483647, %v108_v53 }
 0x227   :  { %vm196_vm1 = vcmp.eq.f32.partialorder %v195_v61, 8.507059e+37  ;;  %vm114_vm2 = vweird.f32 %v108_v53 }
 0x228   :  { %v121_v9 = vor.u32 1.1754944e-38, %v120_v2  ;;  %vm119_vm4 = vcmp.eq.f32.partialorder %v118_v5, 8.507059e+37 }
 0x22a   :  { %v252_v54 = vpop.eup %251 }
 0x22b   :  { %v187_v55 = vmul.f32 %v252_v54, %v185_v51  ;;  %vm192_vm12 = vweird.f32 %v252_v54 }
 0x22c   :  { %v254_v56 = vpop.eup %253  ;;  %vm193_vm15 = vmor %vm191_vm14, %vm192_vm12 }
 0x22d   :  { %v188_v57 = vsub.f32 1.0, %v187_v55  ;;  %v110_v59 = vmul.f32 %v254_v56, %v108_v53  ;;  %vm115_vm0 = vweird.f32 %v254_v56 }
 0x22e   :  { %vm116_vm3 = vmor %vm114_vm2, %vm115_vm0 }
 0x22f   :  { %v189_v60 = vmul.f32 %v252_v54, %v188_v57  ;;  %v111_v62 = vsub.f32 1.0, %v110_v59 }
 0x231   :  { %v190_v63 = vadd.f32 %v252_v54, %v189_v60  ;;  %v112_v4 = vmul.f32 %v254_v56, %v111_v62 }
 0x233   :  { %v194_v6 = vsel %vm193_vm15, %v252_v54, %v190_v63  ;;  %v113_v8 = vadd.f32 %v254_v56, %v112_v4 }
 0x234   :  { %v199_v7 = vsel %vm196_vm1, %v198_v3, %v194_v6 }
 0x235   :  { %201 = vst.msk [vmem:[#allocation2 + $0x4] sm:$0xf] %vm124_vm13, %v199_v7  ;;  %v117_v10 = vsel %vm116_vm3, %v254_v56, %v113_v8 }
 0x236   :  { %v122_v11 = vsel %vm119_vm4, %v121_v9, %v117_v10 }
 0x237   :  { %125 = vst.msk [vmem:[#allocation2] sm:$0xf] %vm124_vm13, %v122_v11 }
 0x23e   :  { %v202_v12 = vld [vmem:[#allocation2] sm:$0xff] }
 0x23f   :  { %205 = vperm.xlu0 %236, %v202_v12  }
 0x2b1   :  { %v206_v13 = vpop.permute.xlu0 %205 }
 0x2b2   :  { %v208_v14 = vmul.f32 %v206_v13, %v325_v0  ;;  %v209_v15 = vmul.f32 %v206_v13, %v330_v1 }
 0x2b4   :  { %210 = vst [vmem:[#allocation6] sm:$0xff] %v208_v14 }
 0x2b5   :  { %211 = vst [vmem:[#allocation6 + $0x8] sm:$0xff] %v209_v15 }
 0x2b6   :  { %222 = dma.vmem_to_hbm [thread:$0]  %s218_s28, 256, %s220_s4, [#allocation4]  }
 0x2b7   :  { %293 = dma.done.wait [#allocation4], 256  }
 0x2b8   :  { %294 = vsyncadd [#allocation4], 4294967040 }
 0x2b9   :  { %227 = vsyncpa [#allocation4], 1 }
 0x2ba   :  { %228 = vsyncpa [#allocation5], 1 }

</bundles_post_ra>
